<compile_context>
chip_gen: v7x
topology: tpu7x:2x2x1
jax: 0.10.0
libtpu: 0.0.40
codegen_flags: <defaults>
</compile_context>

<pallas_src>
import functools

import jax
import jax.numpy as jnp
from jax.experimental import pallas as pl
from jax.experimental.pallas import tpu as pltpu


# ---------------------------------------------------------------------------
# Small helpers
# ---------------------------------------------------------------------------
def _cdiv(a, b):
    return -(-a // b)


def _ceil_to(x, mult):
    return _cdiv(x, mult) * mult


def _vmem_budget_bytes():
    """Generation-aware VMEM budget (v5e/v6e: 128 MiB physical, v7x: 64 MiB)."""
    phys = 64 * 1024 * 1024                       # conservative fallback (v7x floor)
    try:
        info = pltpu.get_tpu_info()
        for name in ("vmem_capacity_bytes", "vmem_size_bytes", "vmem_bytes"):
            v = getattr(info, name, None)
            if v:
                phys = int(v)
                break
    except Exception:
        pass
    # ~70% of physical, leaving headroom for Mosaic-internal scratch / stack.
    return min(int(phys * 0.70), 90 * 1024 * 1024)


def _pick_tile_m(c_in, c_out, M, s_bytes, o_bytes, budget_bytes):
    """Largest lane-tile (multiple of 128) that honestly fits the VMEM budget."""
    m128 = _ceil_to(M, 128)
    # Per-lane-column VMEM cost, max over the two passes:
    #   stats: 2x (double-buffered) streamed x block + f32 cast/transpose temps
    #   emit : 2x streamed x block + 2x output block + f32 y temporary
    per_col = max(2 * c_in * s_bytes + 2 * c_in * 4,
                  2 * c_in * s_bytes + 2 * c_out * o_bytes + c_out * 4)
    tm_budget = max(128, (budget_bytes // per_col) // 128 * 128)
    # 65536-column cap (raised from 16384 per review) keeps each streamed x
    # block >= ~1 MiB for c_in >= 4 f32 while bounding worst-case block size.
    return max(128, min(tm_budget, 65536, m128))


# ---------------------------------------------------------------------------
# Pass 1 kernel: single streaming pass -> per-split sum_x and Gram matrix.
# grid = (n_splits, n_m_per_split); outputs are per-split partials accumulated
# directly in the (f32) output blocks (standard accumulator pattern).
# ---------------------------------------------------------------------------
def _gram_stats_kernel(x_ref, g_ref, sx_ref):
    m = pl.program_id(1)

    @pl.when(m == 0)
    def _init():
        g_ref[...] = jnp.zeros_like(g_ref)
        sx_ref[...] = jnp.zeros_like(sx_ref)

    x = x_ref[...]                                     # [C_in, TM] (stream dtype)
    # G += x @ x.T  (contract over the lane axis; f32 MXU accumulation)
    g_ref[...] += jax.lax.dot_general(
        x, x, dimension_numbers=(((1,), (1,)), ((), ())),
        preferred_element_type=jnp.float32)
    sx_ref[...] += jnp.sum(x.astype(jnp.float32), axis=1, keepdims=True)


# ---------------------------------------------------------------------------
# Pass 2 kernel: out = W_fold @ x + shift (+ activation). M axis is "parallel".
# ---------------------------------------------------------------------------
def _emit_kernel(x_ref, w_ref, b_ref, o_ref, *, activ):
    y = jnp.dot(w_ref[...], x_ref[...], preferred_element_type=jnp.float32)
    y = y + b_ref[...]
    if activ == "gelu":
        # tanh-approx GELU: EUP-routed, cheaper than exact erf on the VALU.
        # TODO(synk): switch to approximate=False for strict nn.GELU parity.
        y = jax.nn.gelu(y, approximate=True)
    elif activ == "relu":
        y = jnp.maximum(y, 0.0)
    o_ref[...] = y.astype(o_ref.dtype)


# ---------------------------------------------------------------------------
# Analytic per-layer BN statistics + folding into one affine map.
# Tiny O(sum_i c_i * C_in^2) work on tiny tensors -> plain XLA glue.
# ---------------------------------------------------------------------------
def _fold_layers(g, sumx, params, *, m_true, eps):
    inv_m = jnp.float32(1.0 / m_true)
    hp = jax.lax.Precision.HIGHEST
    nl = len(params)
    w_eff = params[0]["w"].astype(jnp.float32)                     # [c_1, C_in]
    w_fold = None
    shift = None
    for i in range(nl):
        gamma = params[i]["gamma"].astype(jnp.float32)             # [c_i, 1]
        mean_i = jnp.dot(w_eff, sumx, precision=hp) * inv_m        # [c_i, 1]
        sumsq_i = jnp.sum(jnp.dot(w_eff, g, precision=hp) * w_eff,
                          axis=1, keepdims=True)                   # [c_i, 1]
        # TODO(synk): one-pass E[u^2]-E[u]^2 can cancel catastrophically if
        # |mean| >> std; fine for BN-scale activations, else pre-center x.
        var_i = jnp.maximum(sumsq_i * inv_m - mean_i * mean_i, 0.0)
        scale_i = gamma * jax.lax.rsqrt(var_i + eps)
        if i + 1 < nl:
            # W_eff_{i+1} = W_{i+1} @ diag(scale_i) @ W_eff_i
            w_eff = jnp.dot(params[i + 1]["w"].astype(jnp.float32),
                            scale_i * w_eff, precision=hp)
        else:
            w_fold = scale_i * w_eff
            shift = params[i]["beta"].astype(jnp.float32) - scale_i * mean_i
    return w_fold, shift


# ---------------------------------------------------------------------------
# Channels-major entry point: h is [C_in, M], returns [C_out, M].
# ---------------------------------------------------------------------------
def multi_conv1d_channels_major(h, params, *, activ=None, eps=1e-5,
                                tile_m=None, out_dtype=None):
    C_in, M = h.shape
    if out_dtype is None:
        out_dtype = h.dtype
    c_out = int(params[-1]["w"].shape[0])
    s_bytes = jnp.dtype(h.dtype).itemsize
    o_bytes = jnp.dtype(out_dtype).itemsize
    budget = _vmem_budget_bytes()

    m128 = _ceil_to(M, 128)
    if tile_m is not None:
        tm = _ceil_to(int(tile_m), 128)
    else:
        tm = _pick_tile_m(C_in, c_out, M, s_bytes, o_bytes, budget)
    n_m = _cdiv(m128, tm)
    # 2-way stats split: on v7x the leading "parallel" axis shards across the
    # two TensorCores; on 1-TC chips it just runs sequentially.
    n_splits = 2 if n_m >= 2 else 1
    n_m_per = _cdiv(n_m, n_splits)
    n_m_tot = n_splits * n_m_per
    # Re-balance tm downward so padding never exceeds ~127 columns.
    tm = _ceil_to(_cdiv(m128, n_m_tot), 128)
    m_pad = n_m_tot * tm

    if m_pad != M:
        # zero columns contribute nothing to sum/Gram; means divide by true M.
        h = jnp.pad(h, ((0, 0), (0, m_pad - M)))

    # ---------------- pass 1: sum_x and Gram matrix (x read once) ------------
    g_parts, sx_parts = pl.pallas_call(
        _gram_stats_kernel,
        out_shape=(jax.ShapeDtypeStruct((n_splits, C_in, C_in), jnp.float32),
                   jax.ShapeDtypeStruct((n_splits, C_in, 1), jnp.float32)),
        grid_spec=pltpu.PrefetchScalarGridSpec(
            num_scalar_prefetch=0,
            grid=(n_splits, n_m_per),
            in_specs=[pl.BlockSpec((C_in, tm),
                                   lambda s, m: (0, s * n_m_per + m))],
            out_specs=(pl.BlockSpec((None, C_in, C_in), lambda s, m: (s, 0, 0)),
                       pl.BlockSpec((None, C_in, 1), lambda s, m: (s, 0, 0)))),
        compiler_params=pltpu.CompilerParams(
            dimension_semantics=("parallel", "arbitrary"),
            vmem_limit_bytes=budget),
    )(h)
    g = jnp.sum(g_parts, axis=0)
    sumx = jnp.sum(sx_parts, axis=0)

    # ---------------- fold all conv+BN layers into one affine map ------------
    w_fold, shift = _fold_layers(g, sumx, params, m_true=M, eps=eps)

    # ---------------- pass 2: emit (x read once, out written once) -----------
    out = pl.pallas_call(
        functools.partial(_emit_kernel, activ=activ),
        out_shape=jax.ShapeDtypeStruct((c_out, m_pad), out_dtype),
        grid_spec=pltpu.PrefetchScalarGridSpec(
            num_scalar_prefetch=0,
            grid=(n_m_tot,),
            in_specs=[pl.BlockSpec((C_in, tm), lambda m: (0, m)),
                      pl.BlockSpec((c_out, C_in), lambda m: (0, 0)),
                      pl.BlockSpec((c_out, 1), lambda m: (0, 0))],
            out_specs=pl.BlockSpec((c_out, tm), lambda m: (0, m))),
        compiler_params=pltpu.CompilerParams(
            dimension_semantics=("parallel",),       # v7x megacore shards M
            vmem_limit_bytes=budget),
    )(h, w_fold.astype(h.dtype), shift)

    return out[:, :M]


# ---------------------------------------------------------------------------
# [B, N, C, L] wrapper (same axis convention as the PyTorch module).
# ---------------------------------------------------------------------------
@functools.partial(jax.jit,
                   static_argnames=("activ", "eps", "tile_m", "stream_dtype"))
def multi_conv1d_forward(x, params, *, activ=None, eps=1e-5, tile_m=None,
                         stream_dtype=None):
    B, N, C_in, L = x.shape
    M = B * N * L
    out_dtype = x.dtype
    sdt = jnp.dtype(stream_dtype) if stream_dtype is not None else x.dtype
    # channels-major, lane-dense layout (paid once here).
    # TODO(synk): a channels-major producer/consumer should call
    # multi_conv1d_channels_major directly and skip this transpose round-trip.
    h = jnp.transpose(x, (2, 0, 1, 3)).reshape(C_in, M).astype(sdt)
    out = multi_conv1d_channels_major(h, params, activ=activ, eps=eps,
                                      tile_m=tile_m, out_dtype=out_dtype)
    c_out = out.shape[0]
    return out.reshape(c_out, B, N, L).transpose(1, 2, 0, 3)


# ---------------------------------------------------------------------------
# Parameter construction (mirrors MultiConv1d.__init__ shapes / init).
# ---------------------------------------------------------------------------
def init_multi_conv1d_params(key, in_channels, out_channels, *, num_layers=3,
                             channel_reduction="half", kernel_size=1,
                             weight_gain=1e-6):
    # TODO(synk): only kernel_size=1 (the module default) is implemented.
    assert kernel_size == 1, "only kernel_size=1 supported"
    reducers = {"half": lambda c: max(c // 2, 4),
                "double": lambda c: c * 2,
                "same": lambda c: c}
    channel_func = reducers.get(channel_reduction, lambda c: c)

    params = []
    cur = in_channels
    for i in range(num_layers):
        layer_out = out_channels if i == num_layers - 1 else channel_func(cur)
        key, kw, kb = jax.random.split(key, 3)
        fan_in, fan_out = cur * kernel_size, layer_out * kernel_size
        bound_w = weight_gain * (6.0 / (fan_in + fan_out)) ** 0.5   # xavier_uniform_
        w = jax.random.uniform(kw, (layer_out, cur), jnp.float32, -bound_w, bound_w)
        # nn.Conv1d default bias init (kept for completeness; the bias is an
        # exact no-op under training-mode BatchNorm, so the kernel drops it).
        bound_b = 1.0 / (fan_in ** 0.5)
        b = jax.random.uniform(kb, (layer_out, 1), jnp.float32, -bound_b, bound_b)
        params.append(dict(w=w, b=b,
                           gamma=jnp.ones((layer_out, 1), jnp.float32),
                           beta=jnp.zeros((layer_out, 1), jnp.float32)))
        cur = layer_out
    # Note: self.out_proj exists in __init__ but is never used in forward().
    return params


# ---------------------------------------------------------------------------
# Pure-JAX reference (bias-free: the conv bias cancels exactly under
# training-mode BatchNorm mean subtraction).
# ---------------------------------------------------------------------------
def multi_conv1d_reference(x, params, *, activ=None, eps=1e-5):
    B, N, C, L = x.shape
    h = x.reshape(B * N, C, L)
    for p in params:
        y = jnp.einsum("oc,bcl->bol", p["w"], h,
                       precision=jax.lax.Precision.HIGHEST)
        mean = jnp.mean(y, axis=(0, 2), keepdims=True)
        var = jnp.mean((y - mean) ** 2, axis=(0, 2), keepdims=True)
        y = (y - mean) * jax.lax.rsqrt(var + eps)
        h = y * p["gamma"].reshape(1, -1, 1) + p["beta"].reshape(1, -1, 1)
    if activ == "gelu":
        h = jax.nn.gelu(h, approximate=True)
    elif activ == "relu":
        h = jnp.maximum(h, 0.0)
    return h.reshape(B, N, -1, L)


if __name__ == "__main__":
    key = jax.random.PRNGKey(0)
    kx, kp, kx2 = jax.random.split(key, 3)

    B, N, C_in, L = 2, 8, 4, 16
    out_channels = 8
    x = jax.random.normal(kx, (B, N, C_in, L), dtype=jnp.float32)

    # 1) Spec-faithful configuration (xavier gain=1e-6, activ=None).
    params = init_multi_conv1d_params(kp, C_in, out_channels, num_layers=3,
                                      channel_reduction="half")
    y = jax.block_until_ready(multi_conv1d_forward(x, params, activ=None))
    assert y.shape == (B, N, out_channels, L), y.shape
    assert bool(jnp.all(jnp.isfinite(y)))

    # 2) Numerics vs the pure-JAX reference with non-degenerate weights/BN.
    chk = init_multi_conv1d_params(kp, C_in, out_channels, num_layers=3,
                                   channel_reduction="half", weight_gain=0.5)
    kg = jax.random.PRNGKey(1)
    for p in chk:
        kg, k1, k2 = jax.random.split(kg, 3)
        c = p["gamma"].shape[0]
        p["gamma"] = 1.0 + 0.1 * jax.random.normal(k1, (c, 1), jnp.float32)
        p["beta"] = 0.1 * jax.random.normal(k2, (c, 1), jnp.float32)

    for act in (None, "relu"):
        y_k = jax.block_until_ready(multi_conv1d_forward(x, chk, activ=act))
        y_r = multi_conv1d_reference(x, chk, activ=act)
        assert bool(jnp.allclose(y_k, y_r, rtol=1e-3, atol=1e-5)), (
            act, float(jnp.max(jnp.abs(y_k - y_r))))

    # 3) Multi-tile path: >1 M tile, 2-way stats split, parallel emit pass.
    x2 = jax.random.normal(kx2, (2, 8, 4, 128), dtype=jnp.float32)   # M = 2048
    y_k = jax.block_until_ready(
        multi_conv1d_forward(x2, chk, activ="relu", tile_m=128))
    y_r = multi_conv1d_reference(x2, chk, activ="relu")
    assert bool(jnp.allclose(y_k, y_r, rtol=1e-3, atol=1e-5)), \
        float(jnp.max(jnp.abs(y_k - y_r)))

    # 4) bf16-streaming path (halves HBM read bytes of x); compare against the
    #    f32 reference on the bf16-rounded input with loose tolerance.
    y_b = jax.block_until_ready(
        multi_conv1d_forward(x2, chk, activ=None, tile_m=128,
                             stream_dtype=jnp.bfloat16))
    y_r = multi_conv1d_reference(
        x2.astype(jnp.bfloat16).astype(jnp.float32), chk, activ=None)
    assert bool(jnp.allclose(y_b, y_r, rtol=5e-2, atol=5e-2)), \
        float(jnp.max(jnp.abs(y_b - y_r)))

    print("KERNEL_OK")
</pallas_src>

<mosaic_0001>
module attributes {stable_mosaic.version = 11 : i64} {
  func.func @_gram_stats_kernel(%arg0: i32, %arg1: i32, %arg2: memref<4x256xf32, #tpu.memory_space<vmem>>, %arg3: memref<1x4x4xf32, #tpu.memory_space<vmem>>, %arg4: memref<1x4x1xf32, #tpu.memory_space<vmem>>) attributes {dimension_semantics = [#tpu.dimension_semantics<parallel>, #tpu.dimension_semantics<arbitrary>], iteration_bounds = array<i64: 1, 1>, scalar_prefetch = 0 : i64, scratch_operands = 0 : i64, tpu.core_type = #tpu.core_type<tc>, window_params = [{transform_indices = @transform_0, window_bounds = array<i64: 4, 256>}, {transform_indices = @transform_1, window_bounds = array<i64: 1, 4, 4>}, {transform_indices = @transform_2, window_bounds = array<i64: 1, 4, 1>}]} {
    %c0_i32 = arith.constant 0 : i32
    %0 = arith.cmpi eq, %arg1, %c0_i32 : i32
    %1 = arith.extui %0 : i1 to i32
    %c0_i32_0 = arith.constant 0 : i32
    %2 = arith.cmpi ne, %1, %c0_i32_0 : i32
    scf.if %2 {
      %cst_15 = arith.constant 0.000000e+00 : f32
      %19 = vector.broadcast %cst_15 : f32 to vector<4x4xf32>
      %c0_16 = arith.constant 0 : index
      %c0_17 = arith.constant 0 : index
      %c0_18 = arith.constant 0 : index
      %20 = vector.load %arg3[%c0_16, %c0_17, %c0_18] : memref<1x4x4xf32, #tpu.memory_space<vmem>>, vector<1x4x4xf32>
      %21 = vector.shape_cast %20 : vector<1x4x4xf32> to vector<4x4xf32>
      %22 = vector.shape_cast %19 : vector<4x4xf32> to vector<1x4x4xf32>
      tpu.vector_store %arg3[%c0_16, %c0_17, %c0_18], %22 {strides = array<i32>} : memref<1x4x4xf32, #tpu.memory_space<vmem>>, vector<1x4x4xf32>,
      %cst_19 = arith.constant 0.000000e+00 : f32
      %23 = vector.broadcast %cst_19 : f32 to vector<4x1xf32>
      %c0_20 = arith.constant 0 : index
      %c0_21 = arith.constant 0 : index
      %c0_22 = arith.constant 0 : index
      %24 = vector.load %arg4[%c0_20, %c0_21, %c0_22] : memref<1x4x1xf32, #tpu.memory_space<vmem>>, vector<1x4x1xf32>
      %25 = vector.shape_cast %24 : vector<1x4x1xf32> to vector<4x1xf32>
      %26 = vector.shape_cast %23 : vector<4x1xf32> to vector<1x4x1xf32>
      tpu.vector_store %arg4[%c0_20, %c0_21, %c0_22], %26 {strides = array<i32>} : memref<1x4x1xf32, #tpu.memory_space<vmem>>, vector<1x4x1xf32>,
    } else {
    }
    %c0 = arith.constant 0 : index
    %c0_1 = arith.constant 0 : index
    %3 = vector.load %arg2[%c0, %c0_1] : memref<4x256xf32, #tpu.memory_space<vmem>>, vector<4x256xf32>
    %c0_2 = arith.constant 0 : index
    %c0_3 = arith.constant 0 : index
    %c0_4 = arith.constant 0 : index
    %4 = vector.load %arg3[%c0_2, %c0_3, %c0_4] : memref<1x4x4xf32, #tpu.memory_space<vmem>>, vector<1x4x4xf32>
    %5 = vector.shape_cast %4 : vector<1x4x4xf32> to vector<4x4xf32>
    %cst = arith.constant dense<0.000000e+00> : vector<4x4xf32>
    %6 = tpu.matmul %3, %3, %cst {dimension_numbers = #tpu.dot_dimension_numbers<[1], [1], [0], [0], [0, 0, 1, 0], [], []>} : vector<4x256xf32>, vector<4x256xf32>, vector<4x4xf32> -> vector<4x4xf32>
    %7 = arith.addf %5, %6 : vector<4x4xf32>
    %c0_5 = arith.constant 0 : index
    %c0_6 = arith.constant 0 : index
    %c0_7 = arith.constant 0 : index
    %8 = vector.load %arg3[%c0_5, %c0_6, %c0_7] : memref<1x4x4xf32, #tpu.memory_space<vmem>>, vector<1x4x4xf32>
    %9 = vector.shape_cast %8 : vector<1x4x4xf32> to vector<4x4xf32>
    %10 = vector.shape_cast %7 : vector<4x4xf32> to vector<1x4x4xf32>
    tpu.vector_store %arg3[%c0_5, %c0_6, %c0_7], %10 {strides = array<i32>} : memref<1x4x4xf32, #tpu.memory_space<vmem>>, vector<1x4x4xf32>,
    %c0_8 = arith.constant 0 : index
    %c0_9 = arith.constant 0 : index
    %c0_10 = arith.constant 0 : index
    %11 = vector.load %arg4[%c0_8, %c0_9, %c0_10] : memref<1x4x1xf32, #tpu.memory_space<vmem>>, vector<1x4x1xf32>
    %12 = vector.shape_cast %11 : vector<1x4x1xf32> to vector<4x1xf32>
    %cst_11 = arith.constant dense<0.000000e+00> : vector<4xf32>
    %13 = vector.multi_reduction <add>, %3, %cst_11 [1] : vector<4x256xf32> to vector<4xf32>
    %14 = vector.shape_cast %13 : vector<4xf32> to vector<4x1xf32>
    %15 = arith.addf %12, %14 : vector<4x1xf32>
    %c0_12 = arith.constant 0 : index
    %c0_13 = arith.constant 0 : index
    %c0_14 = arith.constant 0 : index
    %16 = vector.load %arg4[%c0_12, %c0_13, %c0_14] : memref<1x4x1xf32, #tpu.memory_space<vmem>>, vector<1x4x1xf32>
    %17 = vector.shape_cast %16 : vector<1x4x1xf32> to vector<4x1xf32>
    %18 = vector.shape_cast %15 : vector<4x1xf32> to vector<1x4x1xf32>
    tpu.vector_store %arg4[%c0_12, %c0_13, %c0_14], %18 {strides = array<i32>} : memref<1x4x1xf32, #tpu.memory_space<vmem>>, vector<1x4x1xf32>,
    return
  }
  func.func @transform_0(%arg0: i32, %arg1: i32) -> (i32, i32) {
    %c1_i32 = arith.constant 1 : i32
    %0 = arith.muli %arg0, %c1_i32 : i32
    %1 = arith.addi %0, %arg1 : i32
    %c0_i32 = arith.constant 0 : i32
    %c0_i32_0 = arith.constant 0 : i32
    return %c0_i32, %1 : i32, i32
  }
  func.func @transform_1(%arg0: i32, %arg1: i32) -> (i32, i32, i32) {
    %c0_i32 = arith.constant 0 : i32
    %c0_i32_0 = arith.constant 0 : i32
    %c0_i32_1 = arith.constant 0 : i32
    return %arg0, %c0_i32, %c0_i32_0 : i32, i32, i32
  }
  func.func @transform_2(%arg0: i32, %arg1: i32) -> (i32, i32, i32) {
    %c0_i32 = arith.constant 0 : i32
    %c0_i32_0 = arith.constant 0 : i32
    %c0_i32_1 = arith.constant 0 : i32
    return %arg0, %c0_i32, %c0_i32_0 : i32, i32, i32
  }
}

module attributes {stable_mosaic.version = 11 : i64} {
  func.func @_emit_kernel(%arg0: i32, %arg1: memref<4x256xf32, #tpu.memory_space<vmem>>, %arg2: memref<8x4xf32, #tpu.memory_space<vmem>>, %arg3: memref<8x1xf32, #tpu.memory_space<vmem>>, %arg4: memref<8x256xf32, #tpu.memory_space<vmem>>) attributes {dimension_semantics = [#tpu.dimension_semantics<parallel>], iteration_bounds = array<i64: 1>, scalar_prefetch = 0 : i64, scratch_operands = 0 : i64, tpu.core_type = #tpu.core_type<tc>, window_params = [{transform_indices = @transform_0, window_bounds = array<i64: 4, 256>}, {pipeline_mode = #tpu.pipeline_mode<synchronous>, transform_indices = @transform_1, window_bounds = array<i64: 8, 4>}, {pipeline_mode = #tpu.pipeline_mode<synchronous>, transform_indices = @transform_2, window_bounds = array<i64: 8, 1>}, {transform_indices = @transform_3, window_bounds = array<i64: 8, 256>}]} {
    %c0 = arith.constant 0 : index
    %c0_0 = arith.constant 0 : index
    %0 = vector.load %arg2[%c0, %c0_0] : memref<8x4xf32, #tpu.memory_space<vmem>>, vector<8x4xf32>
    %c0_1 = arith.constant 0 : index
    %c0_2 = arith.constant 0 : index
    %1 = vector.load %arg1[%c0_1, %c0_2] : memref<4x256xf32, #tpu.memory_space<vmem>>, vector<4x256xf32>
    %cst = arith.constant dense<0.000000e+00> : vector<8x256xf32>
    %2 = tpu.matmul %0, %1, %cst {dimension_numbers = #tpu.dot_dimension_numbers<[1], [0], [0], [1], [0, 0, 1, 1], [], []>} : vector<8x4xf32>, vector<4x256xf32>, vector<8x256xf32> -> vector<8x256xf32>
    %c0_3 = arith.constant 0 : index
    %c0_4 = arith.constant 0 : index
    %3 = vector.load %arg3[%c0_3, %c0_4] : memref<8x1xf32, #tpu.memory_space<vmem>>, vector<8x1xf32>
    %4 = vector.broadcast %3 : vector<8x1xf32> to vector<8x256xf32>
    %5 = arith.addf %2, %4 : vector<8x256xf32>
    %c0_5 = arith.constant 0 : index
    %c0_6 = arith.constant 0 : index
    %6 = vector.load %arg4[%c0_5, %c0_6] : memref<8x256xf32, #tpu.memory_space<vmem>>, vector<8x256xf32>
    tpu.vector_store %arg4[%c0_5, %c0_6], %5 {strides = array<i32>} : memref<8x256xf32, #tpu.memory_space<vmem>>, vector<8x256xf32>,
    return
  }
  func.func @transform_0(%arg0: i32) -> (i32, i32) {
    %c0_i32 = arith.constant 0 : i32
    %c0_i32_0 = arith.constant 0 : i32
    return %c0_i32, %arg0 : i32, i32
  }
  func.func @transform_1(%arg0: i32) -> (i32, i32) {
    %c0_i32 = arith.constant 0 : i32
    %c0_i32_0 = arith.constant 0 : i32
    %c0_i32_1 = arith.constant 0 : i32
    return %c0_i32, %c0_i32_0 : i32, i32
  }
  func.func @transform_2(%arg0: i32) -> (i32, i32) {
    %c0_i32 = arith.constant 0 : i32
    %c0_i32_0 = arith.constant 0 : i32
    %c0_i32_1 = arith.constant 0 : i32
    return %c0_i32, %c0_i32_0 : i32, i32
  }
  func.func @transform_3(%arg0: i32) -> (i32, i32) {
    %c0_i32 = arith.constant 0 : i32
    %c0_i32_0 = arith.constant 0 : i32
    return %c0_i32, %arg0 : i32, i32
  }
}

</mosaic_0001>

<bundles_post_ra>
// kernel: multi_conv1d_forward.3
= control target key start
LH: loop header
LB: loop body
LE: loop exit
PB: predicated region body
PF: predicated region fallthrough
CT: control target
= control target key end

     0   :  { %vm28_vm0 = vcmask 1043456   ;;  %v117_v1 = vmov 0.0   ;;  %v118_v2 = vmov 0   ;;  %vm24_vm1 = vcmask 31744   ;;  %s154_s0 = inlined_call_operand.vmem [shape: f32[4,256], index: 0, kind: input, shape index: {}]   ;;  %s155_s1 = inlined_call_operand.vmem [shape: f32[8,4], index: 1, kind: input, shape index: {}]   ;;  %s156_s2 = inlined_call_operand.vmem [shape: f32[8,1], index: 2, kind: input, shape index: {}]   ;;  %s157_s3 = inlined_call_operand.vmem [shape: f32[8,256], index: 3, kind: output, shape index: {}]  }
   0x1   :  { %v15_v0 = vld [vmem:[%s154_s0] sm:$0xff]  ;;  %97 = vmatprep.mubr.f32.mxu0 %v117_v1  ;;  %115 = vset.pattern.permute.xlu0 %v118_v2 }
   0x2   :  { %v16_v3 = vld [vmem:[%s156_s2] sm:$0xff]  ;;  %v23_v4 = vcombine.high %v15_v0, %v15_v0 }
   0x3   :  { %19 = vperm.xlu0 %115, %v16_v3   ;;  %v14_v5 = vld [vmem:[%s155_s1] sm:$0xff] }
   0x4   :  { %110 = vmatprep.subr.msk.mxu0 %vm28_vm0, %v23_v4 }
   0x5   :  { %111 = vmatpush1.msk.msra.mxu0 %vm28_vm0, %v15_v0 }
   0x6   :  { %112 = vmatmul.mubr.msk.f32.vlgmr.msra.gmra.mrb[0].mxu0 %vm24_vm1, %v14_v5 }
  0x82   :  { %v20_v6 = vpop.permute.xlu0 %19 }
  0xd9   :  { %v99_v7 = vpop.f32.mrb[0].mxu0 }
  0xda   :  { %v100_v8 = vadd.f32 %v99_v7, %v20_v6  ;;  %v101_v9 = vpop.f32.mrb[1].mxu0 }
  0xdb   :  { %v102_v10 = vadd.f32 %v101_v9, %v20_v6 }
  0xdc   :  { %104 = vst [vmem:[%s157_s3] sm:$0xff] %v100_v8 }
  0xdd   :  { %105 = vst [vmem:[%s157_s3 + $0x8] sm:$0xff] %v102_v10 }

// kernel: multi_conv1d_forward.2
= control target key start
LH: loop header
LB: loop body
LE: loop exit
PB: predicated region body
PF: predicated region fallthrough
CT: control target
= control target key end

     0   :  { %vm119_vm0 = vcmask 1043456   ;;  %vm36_vm1 = vcmask 27648   ;;  %v144_v1 = vmov 0.0   ;;  %vm38_vm2 = vcmask 3072   ;;  %s183_s0 = inlined_call_operand.vmem [shape: f32[4,256], index: 0, kind: input, shape index: {}]   ;;  %s184_s1 = inlined_call_operand.vmem [shape: f32[1,4,4], index: 1, kind: output, shape index: {0}]   ;;  %s185_s2 = inlined_call_operand.vmem [shape: f32[1,4,1], index: 2, kind: output, shape index: {1}]  }
   0x1   :  { %v40_v0 = vld [vmem:[%s183_s0] sm:$0xff]  ;;  %37 = vst.msk [vmem:[%s184_s1] sm:$0xf] %vm36_vm1, %v144_v1 }
   0x2   :  { %v43_v2 = vcombine.high %v40_v0, %v40_v0  ;;  %v120_v3 = vsel %vm119_vm0, %v40_v0, 0.0  ;;  %39 = vst.msk [vmem:[%s185_s2] sm:$0xf] %vm38_vm2, %v144_v1 }
   0x4   :  { %45 = vmatprep.subr.mxu0 %v43_v2  ;;  %109 = vmatprep.mubr.f32.mxu0 %v43_v2  ;;  %v121_v4 = vsel %vm119_vm0, %v43_v2, 0.0 }
   0x5   :  { %46 = vmatpush1.xpose.msra.mxu0 %v40_v0  ;;  %v122_v5 = vadd.f32 %v121_v4, %v120_v3 }
   0x7   :  { %123 = vadd.xlane.f32.xlu0 %v122_v5 }
   0x8   :  { %110 = vmatmul.mubr.f32.vlgmr.msra.gmra.mrb[0].mxu0 %v40_v0  ;;  %v41_v9 = vld [vmem:[%s184_s1] sm:$0xf] }
   0x9   :  { %v118_v6 = vld [vmem:[%s185_s2] sm:$0xf] }
  0x94   :  { %v124_v7 = vpop.xlane.xlu0 %123 }
  0x95   :  { %v125_v8 = vadd.f32 %v124_v7, %v118_v6 }
  0x97   :  { %127 = vst.msk [vmem:[%s185_s2] sm:$0xf] %vm38_vm2, %v125_v8 }
  0xdb   :  { %v111_v10 = vpop.f32.mrb[0].mxu0 }
  0xdc   :  { %v115_v11 = vadd.f32 %v111_v10, %v41_v9  ;;  %v113_v12 = vpop.f32.mrb[1].mxu0 }
  0xde   :  { %117 = vst.msk [vmem:[%s184_s1] sm:$0xf] %vm36_vm1, %v115_v11 }

</bundles_post_ra>
